<compile_context>
chip_gen: v6e
topology: v6e:2x2x1
jax: 0.10.0
libtpu: 0.0.40
codegen_flags: <defaults>
</compile_context>

<pallas_src>
import functools

import jax
import jax.numpy as jnp
from jax import lax
from jax.experimental import pallas as pl
from jax.experimental.pallas import tpu as pltpu

LANE = 128


def _entropy_block_kernel(x_ref, psum_ref, *, rem, needs_mask):
    """Partial softmax-entropy sum for one (NB, C, TILE) block.

    x_ref:    (NB, C, TILE) block in VMEM (channels on sublanes, positions on lanes)
    psum_ref: (1, 1) SMEM scalar -- this block's partial entropy sum
    """
    x = x_ref[...].astype(jnp.float32)               # (NB, C, TILE)

    # Numerically-stable fused softmax entropy over the channel (sublane) axis:
    #   z = x - max(x);  s = sum(exp(z));  ent = log(s) - sum(z*exp(z)) / s
    mx = jnp.max(x, axis=1, keepdims=True)           # (NB, 1, TILE)
    z = x - mx
    e = jnp.exp(z)
    s = jnp.sum(e, axis=1, keepdims=True)            # (NB, 1, TILE)
    ez = jnp.sum(e * z, axis=1, keepdims=True)       # (NB, 1, TILE)
    ent = jnp.log(s) - ez / s                        # per-position entropy

    if needs_mask:
        # Only the last lane-block along the spatial axis contains padding
        # (garbage lanes past the true H*W extent).  Mask *before* the
        # cross-lane sum so any NaN/Inf in the garbage lanes is discarded.
        is_last = pl.program_id(1) == pl.num_programs(1) - 1

        @pl.when(is_last)
        def _():
            col = lax.broadcasted_iota(jnp.int32, ent.shape, 2)
            psum_ref[0, 0] = jnp.sum(jnp.where(col < rem, ent, 0.0))

        @pl.when(jnp.logical_not(is_last))
        def _():
            psum_ref[0, 0] = jnp.sum(ent)
    else:
        psum_ref[0, 0] = jnp.sum(ent)


def entropy_minimization(x_nchw: jax.Array, *, tile_hw: int = 32768,
                         reduction: str = "mean") -> jax.Array:
    """Softmax-entropy loss of an NCHW tensor (softmax over C)."""
    N, C, H, W = x_nchw.shape
    HW = H * W
    M = N * HW
    itemsize = jnp.dtype(x_nchw.dtype).itemsize

    # Sublane padding of the channel axis: f32 pads C to a multiple of 8,
    # bf16 to 16, int8/fp8 to 32.  The in-kernel f32 working copies pad to 8.
    sub_in = 8 * max(1, 4 // itemsize)
    c_pad_in = -(-C // sub_in) * sub_in
    c_pad_f32 = -(-C // 8) * 8

    # VMEM budget for one grid step: 2 double-buffered input blocks in the
    # source dtype + ~4 f32 working copies of the block.  40 MiB keeps the
    # total comfortably under v7x's 64 MiB per-TensorCore VMEM while letting
    # blocks reach the multi-MiB range that hits HBM roofline on v5e/v6e.
    budget_bytes = 40 << 20
    bytes_per_lane = 2 * c_pad_in * itemsize + 4 * c_pad_f32 * 4
    max_tile = max(LANE, (budget_bytes // bytes_per_lane) // LANE * LANE)
    tile_hw = max(LANE, (min(tile_hw, max_tile) // LANE) * LANE)
    # NOTE: for pathologically large C (c_pad_f32 > ~16K) even a 128-lane
    # block exceeds the budget; the compile will then fail at the VMEM limit.

    hw_rounded = pl.cdiv(HW, LANE) * LANE
    x3 = x_nchw.reshape(N, C, HW)                    # free reshape, no HBM copy

    if hw_rounded <= tile_hw:
        # Whole spatial extent fits in one lane-block: fold batch items into a
        # single block so each grid step still moves a large tile (avoids
        # per-step-overhead domination for small images).  Last block dim is
        # the full HW extent -> no padding, no mask needed.
        per_n_bytes = bytes_per_lane * hw_rounded
        nb_cap = max(1, min(N, budget_bytes // per_n_bytes))
        nb = 1
        for d in range(1, N + 1):                    # largest divisor of N <= cap
            if N % d == 0 and d <= nb_cap:
                nb = d
        grid = (N // nb, 1)
        block = (nb, C, HW)
        rem = HW
        needs_mask = False
    else:
        # Tile the flattened spatial axis; mask only the ragged last block.
        nb = 1
        num_blocks = pl.cdiv(HW, tile_hw)
        grid = (N, num_blocks)
        block = (1, C, tile_hw)
        rem = HW - (num_blocks - 1) * tile_hw
        needs_mask = rem != tile_hw

    kernel = functools.partial(_entropy_block_kernel, rem=rem, needs_mask=needs_mask)

    cost = pl.CostEstimate(
        flops=int(6 * N * C * HW),
        transcendentals=int(N * C * HW + N * HW),
        bytes_accessed=int(N * C * HW * itemsize + grid[0] * grid[1] * 4),
    )

    partials = pl.pallas_call(
        kernel,
        out_shape=jax.ShapeDtypeStruct(grid, jnp.float32),
        grid=grid,
        in_specs=[
            pl.BlockSpec(block, lambda n, m: (n, 0, m)),
        ],
        out_specs=pl.BlockSpec(
            (1, 1), lambda n, m: (n, m), memory_space=pltpu.SMEM
        ),
        compiler_params=pltpu.CompilerParams(
            # Each step writes its own output element -> no cross-step carry,
            # both axes can shard across TensorCores (v7x megacore).
            dimension_semantics=("parallel", "parallel"),
            vmem_limit_bytes=48 << 20,
        ),
        cost_estimate=cost,
    )(x3)

    total = jnp.sum(partials)
    if reduction == "mean":
        return total / jnp.float32(M)
    elif reduction == "sum":
        return total
    else:
        # TODO(synk): reduction='none' (per-position entropy map output) not implemented.
        raise NotImplementedError("only 'mean' and 'sum' reductions are supported")


def _reference(x_nchw: jax.Array) -> jax.Array:
    x = x_nchw.astype(jnp.float32)
    logp = jax.nn.log_softmax(x, axis=1)
    p = jnp.exp(logp)
    ent = -(p * logp).sum(axis=1)      # (N, H, W)
    return jnp.mean(ent)


if __name__ == "__main__":
    # Primary shape implied by the module (NCHW, softmax over C).
    key = jax.random.PRNGKey(0)
    N, C, H, W = 2, 4, 16, 16
    x = jax.random.normal(key, (N, C, H, W), dtype=jnp.float32)

    loss = jax.block_until_ready(entropy_minimization(x))
    ref = jax.block_until_ready(_reference(x))
    assert jnp.allclose(loss, ref, atol=1e-5, rtol=1e-5), (loss, ref)

    # Exercise the spatial-tiling + ragged-last-block mask path (HW % tile != 0).
    x2 = jax.random.normal(jax.random.PRNGKey(1), (2, 4, 50, 50), dtype=jnp.float32)
    loss2 = jax.block_until_ready(entropy_minimization(x2, tile_hw=128))
    ref2 = jax.block_until_ready(_reference(x2))
    assert jnp.allclose(loss2, ref2, atol=1e-5, rtol=1e-5), (loss2, ref2)

    print("KERNEL_OK")
</pallas_src>

<mosaic_0001>
module attributes {stable_mosaic.version = 11 : i64} {
  func.func @_entropy_block_kernel(%arg0: i32, %arg1: i32, %arg2: memref<2x4x256xf32, #tpu.memory_space<vmem>>, %arg3: memref<1x1xf32, #tpu.memory_space<smem>>) attributes {dimension_semantics = [#tpu.dimension_semantics<parallel>, #tpu.dimension_semantics<parallel>], iteration_bounds = array<i64: 1, 1>, scalar_prefetch = 0 : i64, scratch_operands = 0 : i64, tpu.core_type = #tpu.core_type<tc>, window_params = [{transform_indices = @transform_0, window_bounds = array<i64: 2, 4, 256>}, {transform_indices = @transform_1, window_bounds = array<i64: 1, 1>}]} {
    %c0 = arith.constant 0 : index
    %c0_0 = arith.constant 0 : index
    %c0_1 = arith.constant 0 : index
    %0 = vector.load %arg2[%c0, %c0_0, %c0_1] : memref<2x4x256xf32, #tpu.memory_space<vmem>>, vector<2x4x256xf32>
    %cst = arith.constant dense<0xFF800000> : vector<2x256xf32>
    %1 = vector.multi_reduction <maximumf>, %0, %cst [1] : vector<2x4x256xf32> to vector<2x256xf32>
    %2 = vector.shape_cast %1 : vector<2x256xf32> to vector<2x1x256xf32>
    %3 = vector.broadcast %2 : vector<2x1x256xf32> to vector<2x4x256xf32>
    %4 = arith.subf %0, %3 : vector<2x4x256xf32>
    %5 = math.exp %4 : vector<2x4x256xf32>
    %cst_2 = arith.constant dense<0.000000e+00> : vector<2x256xf32>
    %6 = vector.multi_reduction <add>, %5, %cst_2 [1] : vector<2x4x256xf32> to vector<2x256xf32>
    %7 = vector.shape_cast %6 : vector<2x256xf32> to vector<2x1x256xf32>
    %8 = arith.mulf %5, %4 : vector<2x4x256xf32>
    %cst_3 = arith.constant dense<0.000000e+00> : vector<2x256xf32>
    %9 = vector.multi_reduction <add>, %8, %cst_3 [1] : vector<2x4x256xf32> to vector<2x256xf32>
    %10 = vector.shape_cast %9 : vector<2x256xf32> to vector<2x1x256xf32>
    %11 = math.log %7 : vector<2x1x256xf32>
    %12 = arith.divf %10, %7 : vector<2x1x256xf32>
    %13 = arith.subf %11, %12 : vector<2x1x256xf32>
    %14 = vector.shape_cast %13 : vector<2x1x256xf32> to vector<1x2x1x256xf32>
    %cst_4 = arith.constant dense<0.000000e+00> : vector<1xf32>
    %15 = vector.multi_reduction <add>, %14, %cst_4 [1, 2, 3] : vector<1x2x1x256xf32> to vector<1xf32>
    %16 = vector.shape_cast %15 : vector<1xf32> to vector<1x1x1x1xf32>
    %17 = vector.extract %16[0, 0, 0, 0] : f32 from vector<1x1x1x1xf32>
    %c0_5 = arith.constant 0 : index
    %c0_6 = arith.constant 0 : index
    %18 = memref.load %arg3[%c0_5, %c0_6] : memref<1x1xf32, #tpu.memory_space<smem>>
    memref.store %17, %arg3[%c0_5, %c0_6] : memref<1x1xf32, #tpu.memory_space<smem>>
    return
  }
  func.func @transform_0(%arg0: i32, %arg1: i32) -> (i32, i32, i32) {
    %c0_i32 = arith.constant 0 : i32
    %c0_i32_0 = arith.constant 0 : i32
    return %arg0, %c0_i32, %arg1 : i32, i32, i32
  }
  func.func @transform_1(%arg0: i32, %arg1: i32) -> (i32, i32) {
    %c0_i32 = arith.constant 0 : i32
    return %arg0, %arg1 : i32, i32
  }
}

</mosaic_0001>

<bundles_post_ra>
// kernel: tpu_custom_call.1
= control target key start
LH: loop header
LB: loop body
LE: loop exit
PB: predicated region body
PF: predicated region fallthrough
CT: control target
= control target key end

     0   :  { %6 = vsyncpa [#allocation3], 0  ;;  %s289_s0 = inlined_call_operand.hbm [shape: f32[2,4,256], index: 0, kind: input, shape index: {}]   ;;  %s290_s1 = inlined_call_operand.hbm [shape: f32[1,1], index: 1, kind: output, shape index: {}]  }
   0x1   :  { %7 = vsyncpa [#allocation4], 0  ;;  %s257_s6 = smov [#allocation2]  }
   0x2   :  { %s13_s7 = sshll.u32 %s257_s6, 4  ;;  %s14_s7 = int_to_ptr.vmem [resolvable:$true] %s13_s7 }
   0x3   :  { %s233_s8 = scalar_lea.vmem %s14_s7, 256  ;;  %p238_p1 = scmp.lt.s32.totalorder %s14_s7, %s14_s7 }
   0x4   :  { %p234_p0 = scmp.ne.s32.totalorder %s14_s7, %s233_s8  ;;  %p239_p2 = scmp.lt.s32.totalorder %s233_s8, %s233_s8 }
   0x6   :  { %p240_p3 = por %p239_p2, %p238_p1 }
   0x8   :  { %p241_p4 = pnand %p240_p3, %p234_p0 }
   0xa   :  { %244 = shalt.err (!%p241_p4)
}
   0xb   :  { %s258_s9 = smov 128   ;;  %s259_s10 = smov 8  }
   0xc   :  { %19 = dma.hbm_to_vmem [thread:$0]  %s289_s0, 256, %s14_s7, [#allocation3], %s258_s9, %s258_s9, %s259_s10  }
   0xd   :  { %253 = dma.done.wait [#allocation3], 256  }
   0xe   :  { %254 = vsyncadd [#allocation3], 4294967040  ;;  %vm31_vm0 = vcmask 1043456   ;;  %v23_v0 = vld [vmem:[#allocation2] sm:$0xff]  ;;  %v24_v1 = vld [vmem:[#allocation2 + $0x8] sm:$0xff]  ;;  %vm164_vm1 = vcmask 1040384  }
   0xf   :  { %v27_v2 = vcombine.high %v23_v0, %v23_v0  ;;  %v28_v3 = vcombine.high %v24_v1, %v24_v1  ;;  %v32_v4 = vsel %vm31_vm0, %v23_v0, -inf  ;;  %v46_v5 = vsel %vm31_vm0, %v24_v1, -inf  ;;  %s260_s13 = smov [#allocation5]  }
  0x10   :  { %v33_v6 = vrot.slane %v32_v4, 4  ;;  %v47_v7 = vrot.slane %v46_v5, 4 }
  0x11   :  { %v39_v8 = vsel %vm31_vm0, %v27_v2, -inf  ;;  %v53_v9 = vsel %vm31_vm0, %v28_v3, -inf }
  0x12   :  { %v34_v10 = vmax.f32 %v32_v4, %v33_v6  ;;  %v40_v11 = vrot.slane %v39_v8, 4  ;;  %v48_v12 = vmax.f32 %v46_v5, %v47_v7  ;;  %v54_v13 = vrot.slane %v53_v9, 4 }
  0x14   :  { %v35_v14 = vrot.slane %v34_v10, 2  ;;  %v41_v15 = vmax.f32 %v39_v8, %v40_v11  ;;  %v49_v16 = vrot.slane %v48_v12, 2  ;;  %v55_v17 = vmax.f32 %v53_v9, %v54_v13 }
  0x16   :  { %v36_v18 = vmax.f32 %v34_v10, %v35_v14  ;;  %v42_v19 = vrot.slane %v41_v15, 2  ;;  %v50_v20 = vmax.f32 %v48_v12, %v49_v16  ;;  %v56_v21 = vrot.slane %v55_v17, 2 }
  0x18   :  { %v37_v22 = vrot.slane %v36_v18, 1  ;;  %v43_v23 = vmax.f32 %v41_v15, %v42_v19  ;;  %v51_v24 = vrot.slane %v50_v20, 1  ;;  %v57_v25 = vmax.f32 %v55_v17, %v56_v21 }
  0x1a   :  { %v38_v26 = vmax.f32 %v36_v18, %v37_v22  ;;  %v44_v27 = vrot.slane %v43_v23, 1  ;;  %v52_v28 = vmax.f32 %v50_v20, %v51_v24  ;;  %v58_v29 = vrot.slane %v57_v25, 1 }
  0x1c   :  { %v45_v30 = vmax.f32 %v43_v23, %v44_v27  ;;  %v59_v31 = vmax.f32 %v57_v25, %v58_v29 }
  0x1e   :  { %v64_v32 = vcombine.low %v38_v26, %v45_v30  ;;  %v65_v33 = vcombine.low %v52_v28, %v59_v31 }
  0x20   :  { %v68_v34 = vsub.f32 %v23_v0, %v64_v32  ;;  %v69_v35 = vsub.f32 %v24_v1, %v65_v33 }
  0x22   :  { %v70_v36 = vmul.f32 1.442695, %v68_v34  ;;  %v72_v37 = vmul.f32 1.442695, %v69_v35 }
  0x24   :  { %205 = vpow2.f32 %v70_v36 }
  0x25   :  { %207 = vpow2.f32 %v72_v37 }
  0x31   :  { %v206_v38 = vpop.eup %205 }
  0x32   :  { %v208_v39 = vpop.eup %207  ;;  %v76_v40 = vcombine.high %v206_v38, %v206_v38  ;;  %v80_v41 = vsel %vm31_vm0, %v206_v38, 0.0  ;;  %v108_v42 = vmul.f32 %v206_v38, %v68_v34 }
  0x33   :  { %v77_v43 = vcombine.high %v208_v39, %v208_v39  ;;  %v81_v44 = vrot.slane %v80_v41, 4  ;;  %v94_v45 = vsel %vm31_vm0, %v208_v39, 0.0  ;;  %v109_v46 = vmul.f32 %v208_v39, %v69_v35 }
  0x34   :  { %v87_v47 = vsel %vm31_vm0, %v76_v40, 0.0  ;;  %v95_v48 = vrot.slane %v94_v45, 4  ;;  %v112_v49 = vcombine.high %v108_v42, %v108_v42  ;;  %v116_v56 = vsel %vm31_vm0, %v108_v42, 0.0 }
  0x35   :  { %v82_v50 = vadd.f32 %v81_v44, %v80_v41  ;;  %v88_v51 = vrot.slane %v87_v47, 4  ;;  %v101_v52 = vsel %vm31_vm0, %v77_v43, 0.0  ;;  %v113_v53 = vcombine.high %v109_v46, %v109_v46 }
  0x36   :  { %v96_v54 = vadd.f32 %v95_v48, %v94_v45  ;;  %v102_v55 = vrot.slane %v101_v52, 4  ;;  %v123_v59 = vsel %vm31_vm0, %v112_v49, 0.0  ;;  %v130_v62 = vsel %vm31_vm0, %v109_v46, 0.0 }
  0x37   :  { %v83_v57 = vrot.slane %v82_v50, 2  ;;  %v89_v58 = vadd.f32 %v88_v51, %v87_v47  ;;  %v117_v1 = vrot.slane %v116_v56, 4  ;;  %v137_v2 = vsel %vm31_vm0, %v113_v53, 0.0 }
  0x38   :  { %v97_v60 = vrot.slane %v96_v54, 2  ;;  %v103_v61 = vadd.f32 %v102_v55, %v101_v52  ;;  %v124_v5 = vrot.slane %v123_v59, 4  ;;  %v131_v8 = vrot.slane %v130_v62, 4 }
  0x39   :  { %v84_v63 = vadd.f32 %v83_v57, %v82_v50  ;;  %v90_v0 = vrot.slane %v89_v58, 2  ;;  %v138_v11 = vrot.slane %v137_v2, 4  ;;  %v118_v14 = vadd.f32 %v117_v1, %v116_v56 }
  0x3a   :  { %v98_v3 = vadd.f32 %v97_v60, %v96_v54  ;;  %v104_v4 = vrot.slane %v103_v61, 2  ;;  %v125_v17 = vadd.f32 %v124_v5, %v123_v59  ;;  %v132_v19 = vadd.f32 %v131_v8, %v130_v62 }
  0x3b   :  { %v85_v6 = vrot.slane %v84_v63, 1  ;;  %v91_v7 = vadd.f32 %v90_v0, %v89_v58  ;;  %v139_v21 = vadd.f32 %v138_v11, %v137_v2  ;;  %v119_v22 = vrot.slane %v118_v14, 2 }
  0x3c   :  { %v99_v9 = vrot.slane %v98_v3, 1  ;;  %v105_v10 = vadd.f32 %v104_v4, %v103_v61  ;;  %v126_v23 = vrot.slane %v125_v17, 2  ;;  %v133_v24 = vrot.slane %v132_v19, 2 }
  0x3d   :  { %v86_v12 = vadd.f32 %v85_v6, %v84_v63  ;;  %v92_v13 = vrot.slane %v91_v7, 1  ;;  %v140_v25 = vrot.slane %v139_v21, 2  ;;  %v120_v26 = vadd.f32 %v119_v22, %v118_v14 }
  0x3e   :  { %v100_v15 = vadd.f32 %v99_v9, %v98_v3  ;;  %v106_v16 = vrot.slane %v105_v10, 1  ;;  %v127_v27 = vadd.f32 %v126_v23, %v125_v17  ;;  %v134_v28 = vadd.f32 %v133_v24, %v132_v19 }
  0x3f   :  { %v93_v18 = vadd.f32 %v92_v13, %v91_v7  ;;  %209 = vlog2.f32 %v86_v12  ;;  %v141_v29 = vadd.f32 %v140_v25, %v139_v21  ;;  %v121_v30 = vrot.slane %v120_v26, 1 }
  0x40   :  { %v107_v20 = vadd.f32 %v106_v16, %v105_v10  ;;  %211 = vlog2.f32 %v100_v15  ;;  %v128_v31 = vrot.slane %v127_v27, 1  ;;  %v135_v32 = vrot.slane %v134_v28, 1 }
  0x41   :  { %213 = vlog2.f32 %v93_v18  ;;  %v142_v34 = vrot.slane %v141_v29, 1  ;;  %v122_v36 = vadd.f32 %v121_v30, %v120_v26 }
  0x42   :  { %215 = vlog2.f32 %v107_v20  ;;  %v129_v38 = vadd.f32 %v128_v31, %v127_v27  ;;  %v136_v40 = vadd.f32 %v135_v32, %v134_v28 }
  0x43   :  { %217 = vrcp.f32 %v86_v12  ;;  %v143_v43 = vadd.f32 %v142_v34, %v141_v29 }
  0x44   :  { %219 = vrcp.f32 %v93_v18 }
  0x45   :  { %221 = vrcp.f32 %v100_v15 }
  0x46   :  { %223 = vrcp.f32 %v107_v20 }
  0x4c   :  { %v210_v33 = vpop.eup %209 }
  0x4d   :  { %v212_v35 = vpop.eup %211  ;;  %v145_v41 = vmul.f32 0.6931472, %v210_v33 }
  0x4e   :  { %v214_v37 = vpop.eup %213  ;;  %v149_v46 = vmul.f32 0.6931472, %v212_v35 }
  0x4f   :  { %v216_v39 = vpop.eup %215  ;;  %v147_v44 = vmul.f32 0.6931472, %v214_v37 }
  0x50   :  { %v218_v42 = vpop.eup %217  ;;  %v151_v49 = vmul.f32 0.6931472, %v216_v39 }
  0x51   :  { %v220_v45 = vpop.eup %219  ;;  %v153_v47 = vmul.f32 %v218_v42, %v122_v36 }
  0x52   :  { %v222_v48 = vpop.eup %221  ;;  %v155_v50 = vmul.f32 %v220_v45, %v129_v38 }
  0x53   :  { %v224_v51 = vpop.eup %223  ;;  %v157_v52 = vmul.f32 %v222_v48, %v136_v40  ;;  %v160_v53 = vsub.f32 %v145_v41, %v153_v47 }
  0x54   :  { %v159_v54 = vmul.f32 %v224_v51, %v143_v43  ;;  %v161_v55 = vsub.f32 %v147_v44, %v155_v50 }
  0x55   :  { %v162_v56 = vsub.f32 %v149_v46, %v157_v52  ;;  %v165_v57 = vsel %vm164_vm1, %v160_v53, 0.0 }
  0x56   :  { %v163_v58 = vsub.f32 %v151_v49, %v159_v54  ;;  %v166_v59 = vsel %vm164_vm1, %v161_v55, 0.0 }
  0x57   :  { %v167_v60 = vadd.f32 %v166_v59, %v165_v57  ;;  %v168_v61 = vsel %vm164_vm1, %v162_v56, 0.0 }
  0x58   :  { %v170_v62 = vsel %vm164_vm1, %v163_v58, 0.0 }
  0x59   :  { %v169_v63 = vadd.f32 %v168_v61, %v167_v60 }
  0x5b   :  { %v171_v0 = vadd.f32 %v170_v62, %v169_v63 }
  0x5d   :  { %172 = vadd.xlane.f32.xlu0 %v171_v0 }
  0xe6   :  { %v173_v1 = vpop.xlane.xlu0 %172 }
  0xe7   :  { %v174_v2 = vrot.slane %v173_v1, 4 }
  0xe9   :  { %v175_v3 = vadd.f32 %v174_v2, %v173_v1 }
  0xeb   :  { %v176_v4 = vrot.slane %v175_v3, 2 }
  0xed   :  { %v177_v5 = vadd.f32 %v176_v4, %v175_v3 }
  0xef   :  { %v178_v6 = vrot.slane %v177_v5, 1 }
  0xf1   :  { %v179_v7 = vadd.f32 %v178_v6, %v177_v5 }
  0xf3   :  { %197 = vpush %v179_v7 }
 0x124   :  { %s198_s0 = spop %197 }
 0x125   :  { %182 = sst [smem:[#allocation5]] %s198_s0 }
 0x126   :  { %190 = dma.smem_to_hbm %s260_s13, 16, %s290_s1, [#allocation4]  }
 0x127   :  { %255 = dma.done.wait [#allocation4], 16  }
 0x128   :  { %256 = vsyncadd [#allocation4], 4294967280 }
 0x129   :  { %194 = sfence }
 0x12a   :  { %195 = vsyncpa [#allocation3], 1 }
 0x12b   :  { %196 = vsyncpa [#allocation4], 1 }

</bundles_post_ra>
